<compile_context>
chip_gen: v5e
topology: v5e:2x2
jax: 0.10.0
libtpu: 0.0.40
codegen_flags: <defaults>
</compile_context>

<pallas_src>
import functools

import jax
import jax.numpy as jnp
from jax.experimental import pallas as pl
from jax.experimental.pallas import tpu as pltpu

_LANE = 128


# ------------------------------ fused Pallas kernel -----------------------------

def _policy_kernel(x_ref, a_ref, w1_ref, w2_ref, w3_ref, b_ref,
                   value_ref, logp_ref, ent_ref, *, n_act):
    """One (agent, batch-tile) grid step.

    Transposed layout: features on sublanes, batch on the 128-wide lane axis, so
    every output is a lane-dense (1, tb) row and the categorical reductions run
    over the tiny action axis (sublanes).  Actor + critic are fused:
      layer 1:  [aw1; cw1]           (2H, D)   @ x   (D, tb)
      layer 2:  blockdiag(aw2, cw2)  (2H, 2H)  @ h1  (2H, tb)
      layer 3:  blockdiag(aw3, cw3)  (A+1, 2H) @ h2  (2H, tb)
    Rows 0..A-1 of the layer-3 output are the logits; row A is the critic value.
    """
    x = x_ref[0]                                   # (D, tb)   compute dtype
    w1 = w1_ref[0]                                 # (2H, D)
    w2 = w2_ref[0]                                 # (2H, 2H)
    w3 = w3_ref[0]                                 # (A+1, 2H)
    b = b_ref[0]                                   # (2H, 3)   f32 bias columns

    h1 = jnp.dot(w1, x, preferred_element_type=jnp.float32) + b[:, 0:1]
    h1 = jnp.maximum(h1, 0.0)
    h2 = jnp.dot(w2, h1.astype(w2.dtype), preferred_element_type=jnp.float32) + b[:, 1:2]
    h2 = jnp.maximum(h2, 0.0)
    out = jnp.dot(w3, h2.astype(w3.dtype), preferred_element_type=jnp.float32)
    out = out + b[0:n_act + 1, 2:3]                # (A+1, tb) f32

    logits = out[0:n_act, :]                       # (A, tb)
    value_ref[0] = out[n_act:n_act + 1, :]         # (1, tb) lane-dense store

    # Categorical(logits): log_softmax over the short action axis (sublanes).
    m = jnp.max(logits, axis=0, keepdims=True)
    z = logits - m
    lse = jnp.log(jnp.sum(jnp.exp(z), axis=0, keepdims=True))
    logp = z - lse                                 # (A, tb)
    p = jnp.exp(logp)

    # log-prob of the taken action: one-hot compare + sum (no TPU gather).
    a_row = a_ref[0]                               # (1, tb) int32, lane-dense
    rows = jax.lax.broadcasted_iota(jnp.int32, logits.shape, 0)
    onehot = (rows == a_row).astype(jnp.float32)
    logp_ref[0] = jnp.sum(logp * onehot, axis=0, keepdims=True)   # (1, tb)

    # Per-element entropy, lane-dense.  Batch mean is finished in the wrapper,
    # keeping the batch grid axis fully parallel (no serialized accumulator).
    ent_ref[0] = -jnp.sum(p * logp, axis=0, keepdims=True)        # (1, tb)


# ---------------------------------- tiling --------------------------------------

def _is_v7x():
    try:
        kind = jax.devices()[0].device_kind.lower()
    except Exception:
        return False
    return "7" in kind


def _pick_batch_tile(b_pad, d, h2, a1, compute_bytes):
    """Largest lane tile that divides the padded batch and fits the VMEM budget."""
    # Per-lane bytes: double-buffered inputs/outputs + in-kernel f32 intermediates.
    per_lane = (2 * (d * compute_bytes + 4)        # x tile + int32 action row (x2 buffers)
                + 2 * 3 * 4                        # value / logp / ent rows  (x2 buffers)
                + (3 * h2 + 3 * a1 + 8) * 4)       # h1 / h2 / logits / p temporaries (rough)
    # v7x: 64 MiB physical VMEM; v5e/v6e: 128 MiB.  Leave headroom for weights,
    # Mosaic internal scratch and pipeline bookkeeping.
    budget = (14 << 20) if _is_v7x() else (28 << 20)
    for tb in (32768, 16384, 8192, 4096, 2048, 1024, 512, 256, 128):
        if b_pad % tb == 0 and tb * per_lane <= budget:
            return tb
    return _LANE


# ------------------------------- pallas_call wrapper ----------------------------

def policy_forward(x, actions, w1f, w2f, w3f, bf):
    """x: (n, D, B_pad); actions: (n, 1, B_pad) int32; packed fused weights/biases."""
    n, d, b_pad = x.shape
    h2 = w1f.shape[1]                # 2 * hidden
    a1 = w3f.shape[1]                # n_actions + 1
    n_act = a1 - 1
    cb = w1f.dtype.itemsize
    tb = _pick_batch_tile(b_pad, d, h2, a1, cb)

    def dspec(rows):                 # per-agent, per-batch-tile blocks
        return pl.BlockSpec((1, rows, tb), lambda i, j: (i, 0, j))

    def wspec(r, c):                 # batch-invariant: VMEM-resident across batch tiles
        return pl.BlockSpec((1, r, c), lambda i, j: (i, 0, 0))

    flops = 2 * n * b_pad * (h2 * d + h2 * h2 + a1 * h2)
    transcendentals = n * b_pad * (2 * n_act + 1)
    bytes_accessed = (x.size * x.dtype.itemsize + actions.size * 4
                      + (w1f.size + w2f.size + w3f.size) * cb + bf.size * 4
                      + 3 * n * b_pad * 4)

    kernel = functools.partial(_policy_kernel, n_act=n_act)

    return pl.pallas_call(
        kernel,
        out_shape=(jax.ShapeDtypeStruct((n, 1, b_pad), jnp.float32),   # value
                   jax.ShapeDtypeStruct((n, 1, b_pad), jnp.float32),   # log-prob(action)
                   jax.ShapeDtypeStruct((n, 1, b_pad), jnp.float32)),  # per-element entropy
        grid=(n, b_pad // tb),
        in_specs=[dspec(d), dspec(1),
                  wspec(h2, d), wspec(h2, h2), wspec(a1, h2), wspec(h2, 3)],
        out_specs=(dspec(1), dspec(1), dspec(1)),
        compiler_params=pltpu.CompilerParams(
            dimension_semantics=("parallel", "parallel"),
            vmem_limit_bytes=(32 << 20) if _is_v7x() else (48 << 20)),
        cost_estimate=pl.CostEstimate(flops=flops,
                                      transcendentals=transcendentals,
                                      bytes_accessed=bytes_accessed),
    )(x, actions, w1f, w2f, w3f, bf)


def _pack_policy_params(ap, cp, compute_dtype):
    """Fuse actor + critic into 3 block-structured weight slabs + one f32 bias slab."""
    n, h, _ = ap["w1"].shape
    a = ap["w3"].shape[1]
    assert 2 * h >= a + 1, "hidden too small to pack the fused layer-3 bias column"
    w1f = jnp.concatenate([ap["w1"], cp["w1"]], axis=1).astype(compute_dtype)        # (n,2H,D)
    zh = jnp.zeros((n, h, h), jnp.float32)
    w2f = jnp.concatenate(
        [jnp.concatenate([ap["w2"], zh], axis=2),
         jnp.concatenate([zh, cp["w2"]], axis=2)], axis=1).astype(compute_dtype)     # (n,2H,2H)
    w3f = jnp.concatenate(
        [jnp.concatenate([ap["w3"], jnp.zeros((n, a, h), jnp.float32)], axis=2),
         jnp.concatenate([jnp.zeros((n, 1, h), jnp.float32), cp["w3"]], axis=2)],
        axis=1).astype(compute_dtype)                                                # (n,A+1,2H)
    b1 = jnp.concatenate([ap["b1"], cp["b1"]], axis=1)                               # (n,2H,1)
    b2 = jnp.concatenate([ap["b2"], cp["b2"]], axis=1)                               # (n,2H,1)
    b3 = jnp.concatenate(
        [ap["b3"], cp["b3"], jnp.zeros((n, 2 * h - a - 1, 1), jnp.float32)], axis=1)  # (n,2H,1)
    bf = jnp.concatenate([b1, b2, b3], axis=2).astype(jnp.float32)                   # (n,2H,3)
    return w1f, w2f, w3f, bf


@functools.partial(jax.jit, static_argnames=("compute_dtype",))
def evaluate_actions_feature_major(x, actions, actor_params, critic_params,
                                   compute_dtype=jnp.float32):
    """Pallas Policy.evaluate_actions on feature-major inputs (no HBM transpose).

    x: (n_agents, obs_dim, B); actions: (n_agents, 1, B) int32.
    compute_dtype=jnp.bfloat16 halves obs/weight DMA bytes and uses the bf16 MXU
    with f32 accumulation; valid on v5e as well as v6e/v7x (all post-matmul
    softmax / entropy / bias math stays f32 on the VPU/EUP).
    """
    n, d, b = x.shape
    b_pad = max(_LANE, -(-b // _LANE) * _LANE)
    x = x.astype(compute_dtype)
    actions = actions.astype(jnp.int32)
    if b_pad != b:   # static: pad the lane axis so tiles stay lane-dense 128-multiples
        x = jnp.pad(x, ((0, 0), (0, 0), (0, b_pad - b)))
        actions = jnp.pad(actions, ((0, 0), (0, 0), (0, b_pad - b)))

    w1f, w2f, w3f, bf = _pack_policy_params(actor_params, critic_params, compute_dtype)
    value_t, logp_t, ent_t = policy_forward(x, actions, w1f, w2f, w3f, bf)

    value = value_t[:, 0, :b].T                    # (B, n_agents)
    action_log_probs = logp_t[:, 0, :b].T          # (B, n_agents)
    dist_entropy = jnp.sum(jnp.mean(ent_t[:, 0, :b], axis=-1))  # sum of per-agent means
    return value, action_log_probs, dist_entropy


@functools.partial(jax.jit, static_argnames=("compute_dtype",))
def evaluate_actions(obs, actions, actor_params, critic_params,
                     compute_dtype=jnp.float32):
    """Compatibility wrapper for PyTorch-layout inputs: obs (n, B, D), actions (n, B, 1).

    NOTE: the swapaxes below materialises one extra HBM copy of obs before the
    (XLA-opaque) pallas_call.  In a real rollout pipeline, store observations
    feature-major and call `evaluate_actions_feature_major` directly.
    """
    x = jnp.swapaxes(obs, 1, 2)
    a = jnp.swapaxes(actions, 1, 2)
    return evaluate_actions_feature_major(x, a, actor_params, critic_params,
                                          compute_dtype=compute_dtype)


# ------------------------ deterministic parameter init -------------------------

def init_mlp_params(key, n_agents, in_dim, hidden, out_dim,
                    orthogonal_last=False, gain=0.01):
    ks = jax.random.split(key, 3)

    def linear(k, fan_in, fan_out):
        bound = 1.0 / jnp.sqrt(jnp.float32(fan_in))
        w = jax.random.uniform(k, (n_agents, fan_out, fan_in), jnp.float32,
                               -bound, bound)
        b = jnp.zeros((n_agents, fan_out, 1), jnp.float32)
        return w, b

    w1, b1 = linear(ks[0], in_dim, hidden)
    w2, b2 = linear(ks[1], hidden, hidden)
    if orthogonal_last:
        ortho = jax.nn.initializers.orthogonal(scale=gain)
        w3 = jnp.stack([ortho(k, (out_dim, hidden), jnp.float32)
                        for k in jax.random.split(ks[2], n_agents)])
        b3 = jnp.zeros((n_agents, out_dim, 1), jnp.float32)
    else:
        w3, b3 = linear(ks[2], hidden, out_dim)
    return {"w1": w1, "b1": b1, "w2": w2, "b2": b2, "w3": w3, "b3": b3}


# ------------------------------ pure-JAX reference ------------------------------

def _ref_mlp(x, p, a):
    h = jnp.maximum(x @ p["w1"][a].T + p["b1"][a][:, 0], 0.0)
    h = jnp.maximum(h @ p["w2"][a].T + p["b2"][a][:, 0], 0.0)
    return h @ p["w3"][a].T + p["b3"][a][:, 0]


def evaluate_actions_ref(obs, actions, actor_params, critic_params):
    n = obs.shape[0]
    vals, logps, ents = [], [], []
    for a in range(n):
        logits = _ref_mlp(obs[a], actor_params, a)
        logp = jax.nn.log_softmax(logits, axis=-1)
        lp = jnp.take_along_axis(logp, actions[a], axis=-1)
        ent = -jnp.sum(jnp.exp(logp) * logp, axis=-1)
        vals.append(_ref_mlp(obs[a], critic_params, a))
        logps.append(lp)
        ents.append(jnp.mean(ent))
    return (jnp.concatenate(vals, axis=-1),
            jnp.concatenate(logps, axis=-1),
            sum(ents))


# ------------------------------------ main --------------------------------------

if __name__ == "__main__":
    N_AGENTS, BATCH, OBS_DIM, HIDDEN, ACTION_DIM = 2, 8, 16, 32, 5

    root = jax.random.PRNGKey(0)
    k_obs, k_act, k_actor, k_critic = jax.random.split(root, 4)

    obs = jax.random.normal(k_obs, (N_AGENTS, BATCH, OBS_DIM), jnp.float32)
    actions = jax.random.randint(k_act, (N_AGENTS, BATCH, 1), 0, ACTION_DIM, jnp.int32)

    # actor: last-layer orthogonal init, gain=0.01 (as in Policy.__init__)
    actor_params = init_mlp_params(k_actor, N_AGENTS, OBS_DIM, HIDDEN, ACTION_DIM,
                                   orthogonal_last=True, gain=0.01)
    # critic: per-agent decentralised value head, output dim 1
    critic_params = init_mlp_params(k_critic, N_AGENTS, OBS_DIM, HIDDEN, 1)
    # TODO(synk): target_critic/soft_update, Categorical.sample (Policy.act),
    # action_mask and the centralised-critic variant are bookkeeping / RNG /
    # config paths, not kernel compute — omitted here.

    v_ref, lp_ref, e_ref = evaluate_actions_ref(obs, actions, actor_params, critic_params)

    # f32 path, PyTorch-layout compat wrapper
    value, logp, entropy = evaluate_actions(obs, actions, actor_params, critic_params)
    jax.block_until_ready((value, logp, entropy))
    assert jnp.allclose(value, v_ref, atol=5e-4, rtol=5e-4)
    assert jnp.allclose(logp, lp_ref, atol=5e-4, rtol=5e-4)
    assert jnp.allclose(entropy, e_ref, atol=5e-4, rtol=5e-4)

    # feature-major (pipeline-native) path — no wrapper-side HBM transpose
    x_fm = jnp.swapaxes(obs, 1, 2)
    a_fm = jnp.swapaxes(actions, 1, 2)
    v2, lp2, e2 = evaluate_actions_feature_major(x_fm, a_fm, actor_params, critic_params)
    jax.block_until_ready((v2, lp2, e2))
    assert jnp.allclose(v2, v_ref, atol=5e-4, rtol=5e-4)
    assert jnp.allclose(lp2, lp_ref, atol=5e-4, rtol=5e-4)
    assert jnp.allclose(e2, e_ref, atol=5e-4, rtol=5e-4)

    # bf16-matmul / f32-accumulate path (valid on v5e as well as v6e/v7x)
    v16, lp16, e16 = evaluate_actions(obs, actions, actor_params, critic_params,
                                      compute_dtype=jnp.bfloat16)
    jax.block_until_ready((v16, lp16, e16))
    assert jnp.allclose(v16, v_ref, atol=5e-2, rtol=5e-2)
    assert jnp.allclose(lp16, lp_ref, atol=5e-2, rtol=5e-2)
    assert jnp.allclose(e16, e_ref, atol=5e-2, rtol=5e-2)

    print("KERNEL_OK")
</pallas_src>

<mosaic_0001>
module attributes {stable_mosaic.version = 11 : i64} {
  func.func @_policy_kernel(%arg0: i32, %arg1: i32, %arg2: memref<1x16x128xf32, #tpu.memory_space<vmem>>, %arg3: memref<1x1x128xi32, #tpu.memory_space<vmem>>, %arg4: memref<1x64x16xf32, #tpu.memory_space<vmem>>, %arg5: memref<1x64x64xf32, #tpu.memory_space<vmem>>, %arg6: memref<1x6x64xf32, #tpu.memory_space<vmem>>, %arg7: memref<1x64x3xf32, #tpu.memory_space<vmem>>, %arg8: memref<1x1x128xf32, #tpu.memory_space<vmem>>, %arg9: memref<1x1x128xf32, #tpu.memory_space<vmem>>, %arg10: memref<1x1x128xf32, #tpu.memory_space<vmem>>) attributes {dimension_semantics = [#tpu.dimension_semantics<parallel>, #tpu.dimension_semantics<parallel>], iteration_bounds = array<i64: 2, 1>, scalar_prefetch = 0 : i64, scratch_operands = 0 : i64, tpu.core_type = #tpu.core_type<tc>, window_params = [{transform_indices = @transform_0, window_bounds = array<i64: 1, 16, 128>}, {transform_indices = @transform_1, window_bounds = array<i64: 1, 1, 128>}, {transform_indices = @transform_2, window_bounds = array<i64: 1, 64, 16>}, {transform_indices = @transform_3, window_bounds = array<i64: 1, 64, 64>}, {transform_indices = @transform_4, window_bounds = array<i64: 1, 6, 64>}, {transform_indices = @transform_5, window_bounds = array<i64: 1, 64, 3>}, {transform_indices = @transform_6, window_bounds = array<i64: 1, 1, 128>}, {transform_indices = @transform_7, window_bounds = array<i64: 1, 1, 128>}, {transform_indices = @transform_8, window_bounds = array<i64: 1, 1, 128>}]} {
    %c0 = arith.constant 0 : index
    %c0_0 = arith.constant 0 : index
    %c0_1 = arith.constant 0 : index
    %0 = vector.load %arg2[%c0, %c0_0, %c0_1] : memref<1x16x128xf32, #tpu.memory_space<vmem>>, vector<1x16x128xf32>
    %1 = vector.shape_cast %0 : vector<1x16x128xf32> to vector<16x128xf32>
    %c0_2 = arith.constant 0 : index
    %c0_3 = arith.constant 0 : index
    %c0_4 = arith.constant 0 : index
    %2 = vector.load %arg4[%c0_2, %c0_3, %c0_4] : memref<1x64x16xf32, #tpu.memory_space<vmem>>, vector<1x64x16xf32>
    %3 = vector.shape_cast %2 : vector<1x64x16xf32> to vector<64x16xf32>
    %c0_5 = arith.constant 0 : index
    %c0_6 = arith.constant 0 : index
    %c0_7 = arith.constant 0 : index
    %4 = vector.load %arg5[%c0_5, %c0_6, %c0_7] : memref<1x64x64xf32, #tpu.memory_space<vmem>>, vector<1x64x64xf32>
    %5 = vector.shape_cast %4 : vector<1x64x64xf32> to vector<64x64xf32>
    %c0_8 = arith.constant 0 : index
    %c0_9 = arith.constant 0 : index
    %c0_10 = arith.constant 0 : index
    %6 = vector.load %arg6[%c0_8, %c0_9, %c0_10] : memref<1x6x64xf32, #tpu.memory_space<vmem>>, vector<1x6x64xf32>
    %7 = vector.shape_cast %6 : vector<1x6x64xf32> to vector<6x64xf32>
    %c0_11 = arith.constant 0 : index
    %c0_12 = arith.constant 0 : index
    %c0_13 = arith.constant 0 : index
    %8 = vector.load %arg7[%c0_11, %c0_12, %c0_13] : memref<1x64x3xf32, #tpu.memory_space<vmem>>, vector<1x64x3xf32>
    %9 = vector.shape_cast %8 : vector<1x64x3xf32> to vector<64x3xf32>
    %cst = arith.constant dense<0.000000e+00> : vector<64x128xf32>
    %10 = tpu.matmul %3, %1, %cst {dimension_numbers = #tpu.dot_dimension_numbers<[1], [0], [0], [1], [0, 0, 1, 1], [], []>} : vector<64x16xf32>, vector<16x128xf32>, vector<64x128xf32> -> vector<64x128xf32>
    %11 = vector.extract_strided_slice %9 {offsets = [0, 0], sizes = [64, 1], strides = [1, 1]} : vector<64x3xf32> to vector<64x1xf32>
    %12 = vector.broadcast %11 : vector<64x1xf32> to vector<64x128xf32>
    %13 = arith.addf %10, %12 : vector<64x128xf32>
    %cst_14 = arith.constant 0.000000e+00 : f32
    %14 = vector.broadcast %cst_14 : f32 to vector<64x128xf32>
    %15 = arith.maximumf %13, %14 : vector<64x128xf32>
    %cst_15 = arith.constant dense<0.000000e+00> : vector<64x128xf32>
    %16 = tpu.matmul %5, %15, %cst_15 {dimension_numbers = #tpu.dot_dimension_numbers<[1], [0], [0], [1], [0, 0, 1, 1], [], []>} : vector<64x64xf32>, vector<64x128xf32>, vector<64x128xf32> -> vector<64x128xf32>
    %17 = vector.extract_strided_slice %9 {offsets = [0, 1], sizes = [64, 1], strides = [1, 1]} : vector<64x3xf32> to vector<64x1xf32>
    %18 = vector.broadcast %17 : vector<64x1xf32> to vector<64x128xf32>
    %19 = arith.addf %16, %18 : vector<64x128xf32>
    %cst_16 = arith.constant 0.000000e+00 : f32
    %20 = vector.broadcast %cst_16 : f32 to vector<64x128xf32>
    %21 = arith.maximumf %19, %20 : vector<64x128xf32>
    %cst_17 = arith.constant dense<0.000000e+00> : vector<6x128xf32>
    %22 = tpu.matmul %7, %21, %cst_17 {dimension_numbers = #tpu.dot_dimension_numbers<[1], [0], [0], [1], [0, 0, 1, 1], [], []>} : vector<6x64xf32>, vector<64x128xf32>, vector<6x128xf32> -> vector<6x128xf32>
    %23 = vector.extract_strided_slice %9 {offsets = [0, 2], sizes = [6, 1], strides = [1, 1]} : vector<64x3xf32> to vector<6x1xf32>
    %24 = vector.broadcast %23 : vector<6x1xf32> to vector<6x128xf32>
    %25 = arith.addf %22, %24 : vector<6x128xf32>
    %26 = vector.extract_strided_slice %25 {offsets = [0, 0], sizes = [5, 128], strides = [1, 1]} : vector<6x128xf32> to vector<5x128xf32>
    %27 = vector.extract_strided_slice %25 {offsets = [5, 0], sizes = [1, 128], strides = [1, 1]} : vector<6x128xf32> to vector<1x128xf32>
    %c0_18 = arith.constant 0 : index
    %c0_19 = arith.constant 0 : index
    %c0_20 = arith.constant 0 : index
    %28 = vector.load %arg8[%c0_18, %c0_19, %c0_20] : memref<1x1x128xf32, #tpu.memory_space<vmem>>, vector<1x1x128xf32>
    %29 = vector.shape_cast %28 : vector<1x1x128xf32> to vector<1x128xf32>
    %30 = vector.shape_cast %27 : vector<1x128xf32> to vector<1x1x128xf32>
    tpu.vector_store %arg8[%c0_18, %c0_19, %c0_20], %30 {strides = array<i32>} : memref<1x1x128xf32, #tpu.memory_space<vmem>>, vector<1x1x128xf32>,
    %cst_21 = arith.constant dense<0xFF800000> : vector<128xf32>
    %31 = vector.multi_reduction <maximumf>, %26, %cst_21 [0] : vector<5x128xf32> to vector<128xf32>
    %32 = vector.shape_cast %31 : vector<128xf32> to vector<1x128xf32>
    %33 = vector.broadcast %32 : vector<1x128xf32> to vector<5x128xf32>
    %34 = arith.subf %26, %33 : vector<5x128xf32>
    %35 = math.exp %34 : vector<5x128xf32>
    %cst_22 = arith.constant dense<0.000000e+00> : vector<128xf32>
    %36 = vector.multi_reduction <add>, %35, %cst_22 [0] : vector<5x128xf32> to vector<128xf32>
    %37 = vector.shape_cast %36 : vector<128xf32> to vector<1x128xf32>
    %38 = math.log %37 : vector<1x128xf32>
    %39 = vector.broadcast %38 : vector<1x128xf32> to vector<5x128xf32>
    %40 = arith.subf %34, %39 : vector<5x128xf32>
    %41 = math.exp %40 : vector<5x128xf32>
    %c0_23 = arith.constant 0 : index
    %c0_24 = arith.constant 0 : index
    %c0_25 = arith.constant 0 : index
    %42 = vector.load %arg3[%c0_23, %c0_24, %c0_25] : memref<1x1x128xi32, #tpu.memory_space<vmem>>, vector<1x1x128xi32>
    %43 = vector.shape_cast %42 : vector<1x1x128xi32> to vector<1x128xi32>
    %44 = tpu.iota {dimensions = array<i32: 0>} : vector<5x128xi32>
    %45 = vector.broadcast %43 : vector<1x128xi32> to vector<5x128xi32>
    %46 = arith.cmpi eq, %44, %45 : vector<5x128xi32>
    %47 = arith.extui %46 : vector<5x128xi1> to vector<5x128xi32>
    %48 = arith.sitofp %47 : vector<5x128xi32> to vector<5x128xf32>
    %49 = arith.mulf %40, %48 : vector<5x128xf32>
    %cst_26 = arith.constant dense<0.000000e+00> : vector<128xf32>
    %50 = vector.multi_reduction <add>, %49, %cst_26 [0] : vector<5x128xf32> to vector<128xf32>
    %51 = vector.shape_cast %50 : vector<128xf32> to vector<1x128xf32>
    %c0_27 = arith.constant 0 : index
    %c0_28 = arith.constant 0 : index
    %c0_29 = arith.constant 0 : index
    %52 = vector.load %arg9[%c0_27, %c0_28, %c0_29] : memref<1x1x128xf32, #tpu.memory_space<vmem>>, vector<1x1x128xf32>
    %53 = vector.shape_cast %52 : vector<1x1x128xf32> to vector<1x128xf32>
    %54 = vector.shape_cast %51 : vector<1x128xf32> to vector<1x1x128xf32>
    tpu.vector_store %arg9[%c0_27, %c0_28, %c0_29], %54 {strides = array<i32>} : memref<1x1x128xf32, #tpu.memory_space<vmem>>, vector<1x1x128xf32>,
    %55 = arith.mulf %41, %40 : vector<5x128xf32>
    %cst_30 = arith.constant dense<0.000000e+00> : vector<128xf32>
    %56 = vector.multi_reduction <add>, %55, %cst_30 [0] : vector<5x128xf32> to vector<128xf32>
    %57 = vector.shape_cast %56 : vector<128xf32> to vector<1x128xf32>
    %cst_31 = arith.constant 0.000000e+00 : f32
    %58 = vector.broadcast %cst_31 : f32 to vector<1x128xf32>
    %59 = arith.subf %58, %57 : vector<1x128xf32>
    %c0_32 = arith.constant 0 : index
    %c0_33 = arith.constant 0 : index
    %c0_34 = arith.constant 0 : index
    %60 = vector.load %arg10[%c0_32, %c0_33, %c0_34] : memref<1x1x128xf32, #tpu.memory_space<vmem>>, vector<1x1x128xf32>
    %61 = vector.shape_cast %60 : vector<1x1x128xf32> to vector<1x128xf32>
    %62 = vector.shape_cast %59 : vector<1x128xf32> to vector<1x1x128xf32>
    tpu.vector_store %arg10[%c0_32, %c0_33, %c0_34], %62 {strides = array<i32>} : memref<1x1x128xf32, #tpu.memory_space<vmem>>, vector<1x1x128xf32>,
    return
  }
  func.func @transform_0(%arg0: i32, %arg1: i32) -> (i32, i32, i32) {
    %c0_i32 = arith.constant 0 : i32
    %c0_i32_0 = arith.constant 0 : i32
    return %arg0, %c0_i32, %arg1 : i32, i32, i32
  }
  func.func @transform_1(%arg0: i32, %arg1: i32) -> (i32, i32, i32) {
    %c0_i32 = arith.constant 0 : i32
    %c0_i32_0 = arith.constant 0 : i32
    return %arg0, %c0_i32, %arg1 : i32, i32, i32
  }
  func.func @transform_2(%arg0: i32, %arg1: i32) -> (i32, i32, i32) {
    %c0_i32 = arith.constant 0 : i32
    %c0_i32_0 = arith.constant 0 : i32
    %c0_i32_1 = arith.constant 0 : i32
    return %arg0, %c0_i32, %c0_i32_0 : i32, i32, i32
  }
  func.func @transform_3(%arg0: i32, %arg1: i32) -> (i32, i32, i32) {
    %c0_i32 = arith.constant 0 : i32
    %c0_i32_0 = arith.constant 0 : i32
    %c0_i32_1 = arith.constant 0 : i32
    return %arg0, %c0_i32, %c0_i32_0 : i32, i32, i32
  }
  func.func @transform_4(%arg0: i32, %arg1: i32) -> (i32, i32, i32) {
    %c0_i32 = arith.constant 0 : i32
    %c0_i32_0 = arith.constant 0 : i32
    %c0_i32_1 = arith.constant 0 : i32
    return %arg0, %c0_i32, %c0_i32_0 : i32, i32, i32
  }
  func.func @transform_5(%arg0: i32, %arg1: i32) -> (i32, i32, i32) {
    %c0_i32 = arith.constant 0 : i32
    %c0_i32_0 = arith.constant 0 : i32
    %c0_i32_1 = arith.constant 0 : i32
    return %arg0, %c0_i32, %c0_i32_0 : i32, i32, i32
  }
  func.func @transform_6(%arg0: i32, %arg1: i32) -> (i32, i32, i32) {
    %c0_i32 = arith.constant 0 : i32
    %c0_i32_0 = arith.constant 0 : i32
    return %arg0, %c0_i32, %arg1 : i32, i32, i32
  }
  func.func @transform_7(%arg0: i32, %arg1: i32) -> (i32, i32, i32) {
    %c0_i32 = arith.constant 0 : i32
    %c0_i32_0 = arith.constant 0 : i32
    return %arg0, %c0_i32, %arg1 : i32, i32, i32
  }
  func.func @transform_8(%arg0: i32, %arg1: i32) -> (i32, i32, i32) {
    %c0_i32 = arith.constant 0 : i32
    %c0_i32_0 = arith.constant 0 : i32
    return %arg0, %c0_i32, %arg1 : i32, i32, i32
  }
}

</mosaic_0001>

<bundles_post_ra>
// kernel: evaluate_actions_feature_major.1
= control target key start
LH: loop header
LB: loop body
LE: loop exit
PB: predicated region body
PF: predicated region fallthrough
CT: control target
= control target key end

     0   :  { %s1498_s0 = inlined_call_operand.vmem [shape: f32[2,16,128], index: 0, kind: input, shape index: {}]   ;;  %s1499_s1 = inlined_call_operand.vmem [shape: s32[2,1,128], index: 1, kind: input, shape index: {}]   ;;  %s1500_s2 = inlined_call_operand.vmem [shape: f32[2,64,16], index: 2, kind: input, shape index: {}]   ;;  %s1501_s3 = inlined_call_operand.vmem [shape: f32[2,64,64], index: 3, kind: input, shape index: {}]   ;;  %s1502_s4 = inlined_call_operand.vmem [shape: f32[2,6,64], index: 4, kind: input, shape index: {}]   ;;  %s1503_s5 = inlined_call_operand.vmem [shape: f32[2,64,3], index: 5, kind: input, shape index: {}]   ;;  %s1504_s6 = inlined_call_operand.hbm [shape: f32[2,1,128], index: 6, kind: output, shape index: {0}]   ;;  %s1505_s7 = inlined_call_operand.hbm [shape: f32[2,1,128], index: 7, kind: output, shape index: {1}]   ;;  %s1506_s8 = inlined_call_operand.vmem [shape: f32[2,1,128], index: 8, kind: output, shape index: {2}]  }
   0x1   :  { %1507 = sst [smem:[#allocation8_spill]] %s1498_s0 }
   0x2   :  { %14 = vsyncpa [#allocation3], 0 }
   0x3   :  { %16 = vsyncpa [#allocation3 + $0x1], 0 }
   0x4   :  { %17 = vsyncpa [#allocation5], 0 }
   0x5   :  { %19 = vsyncpa [#allocation5 + $0x1], 0  ;;  %s1296_s27 = smov 0   ;;  %s1298_s28 = smov 0  }
   0x6   :  { %s1300_s29 = smov 0   ;;  %s1302_s30 = smov 0  }
   0x7   :  { %s1304_s9 = smov 0   ;;  %s1306_s10 = smov 0  }
   0x8 LB: > { %s1008_s11 = sadd.s32 4294967295, %s1245_s10   ;;  %s1009_s12 = sadd.s32 4294967294, %s1245_s10   ;;  %s1245_s10 = sphi %s1306_s10, %s25_s10   ;;  %s1241_s9 = sphi %s1304_s9, %s1516_s9   ;;  %s1237_s30 = sphi %s1302_s30, %s1515_s30   ;;  %s1233_s29 = sphi %s1300_s29, %s1514_s29   ;;  %s1229_s28 = sphi %s1298_s28, %s1513_s28   ;;  %s1225_s27 = sphi %s1296_s27, %s1512_s27  }
   0x9   : > { %s37_s13 = sadd.s32 1, %s1241_s9  ;;  %s206_s14 = sadd.s32 1, %s1233_s29 }
   0xa   : > { %p39_p0 = scmp.ge.s32.totalorder %s37_s13, 2  ;;  %p216_p1 = scmp.ne.s32.totalorder %s1233_s29, %s1229_s28 }
   0xb   : > { %p217_p2 = scmp.eq.s32.totalorder %s1008_s11, 1  ;;  %p222_p3 = scmp.ne.s32.totalorder %s1229_s28, %s1225_s27 }
   0xc   : > { %s1518_s13 = smov (%p39_p0, %s37_s13), 0  ;;  %p223_p5 = scmp.eq.s32.totalorder %s1009_s12, 1 }
   0xd   : > { %p1336_p4 = por %p217_p2, %p216_p1  ;;  %s201_s16 = ssub.s32 %s1241_s9, %s1518_s13 }
   0xe   : > { %p1012_p6 = scmp.ge.s32.totalorder %s1245_s10, 1  ;;  %p204_p7 = scmp.eq.s32.totalorder %s201_s16, 0 }
   0xf   : > { %p1343_p8 = por %p223_p5, %p222_p3  ;;  %p348_p9 = scmp.lt.s32.totalorder %s1245_s10, 3 }
  0x10   : > { %s1349_s18 = scalar_select %p204_p7, %s1233_s29, %s206_s14  }
  0x11   : > { %p349_p10 = pnand %p1012_p6, %p348_p9 }
  0x12   : > { %p419_p11 = scmp.lt.s32.totalorder (!%p349_p10), %s1237_s30, 1  ;;  %s1510_s0 = sld [smem:[#allocation8_spill]] (!%p349_p10) }
  0x13   : > { %352 = sbr.rel (%p349_p10) target bundleno = 588 (0x24c), region = 44 }
  0x18   : > { %v1247_v0 = vmov 0   ;;  %s1353_s19 = scalar_select %p419_p11, %s1237_s30, 1  ;;  %vm525_vm0 = vcmask 130048   ;;  %v1248_v29 = vmov 1   ;;  %vm631_vm1 = vcmask 523264  }
  0x19   : > { %1121 = vset.pattern.permute.xlu1 %v1247_v0  ;;  %1120 = vset.pattern.permute.xlu0 %v1247_v0  ;;  %vm733_vm2 = vcmask 1044480  }
  0x1a   : > { %1122 = vset.pattern.permute.xlu2 %v1247_v0  ;;  %s1356_s20 = sshll.u32 %s1353_s19, 6  ;;  %s1042_s21 = sshll.u32 %s1353_s19, 4 }
  0x1b   : > { %s1363_s24 = scalar_lea.vmem %s1503_s5, %s1356_s20  ;;  %s426_s11 = scalar_lea.vmem %s1510_s0, %s1042_s21 }
  0x1c   : > { %v482_v1 = vld [vmem:[%s1363_s24 + $0x28] sm:$0xff]  ;;  %v458_v3 = vld [vmem:[%s426_s11] sm:$0xff]  ;;  %s1373_s16 = scalar_lea.vmem %s1500_s2, %s1356_s20  ;;  %v484_v5 = vld [vmem:[%s1363_s24 + $0x38] sm:$0xff]  ;;  %s442_s23 = scalar_lea.vmem %s1501_s3, %s1356_s20 }
  0x1d   : > { %v459_v2 = vld [vmem:[%s426_s11 + $0x8] sm:$0xff]  ;;  %512 = vperm.xlu1 %1121, %v482_v1   ;;  %v460_v4 = vld [vmem:[%s1373_s16] sm:$0xff]  ;;  %522 = vperm.xlu0 %1120, %v484_v5   ;;  %v480_v7 = vld [vmem:[%s1363_s24 + $0x18] sm:$0xff]  ;;  %s1019_s26 = sshll.u32 %s1353_s19, 3 }
  0x1e   : > { %564 = vmatpush.msra.mxu0 %v459_v2  ;;  %1046 = vmatpush.msra.mxu2 %v459_v2  ;;  %v465_v6 = vld [vmem:[%s1373_s16 + $0x28] sm:$0xff]  ;;  %v481_v8 = vld [vmem:[%s1363_s24 + $0x20] sm:$0xff]  ;;  %v483_v9 = vld [vmem:[%s1363_s24 + $0x30] sm:$0xff]  ;;  %s446_s14 = scalar_lea.vmem %s1502_s4, %s1019_s26 }
  0x1f   : > { %502 = vperm.xlu2 %1122, %v480_v7   ;;  %v461_v10 = vld [vmem:[%s1373_s16 + $0x8] sm:$0xff]  ;;  %v466_v11 = vld [vmem:[%s1373_s16 + $0x30] sm:$0xff]  ;;  %v1391_v13 = vld [vmem:[%s1363_s24] sm:$0xff] }
  0x20   : > { %565 = vmatpush.msra.mxu0 %v458_v3  ;;  %1047 = vmatpush.msra.mxu2 %v458_v3  ;;  %v1386_v12 = vld [vmem:[%s1363_s24 + $0x10] sm:$0xff]  ;;  %v478_v14 = vld [vmem:[%s1363_s24 + $0x8] sm:$0xff]  ;;  %v467_v16 = vld [vmem:[%s1373_s16 + $0x38] sm:$0xff] }
  0x21   : > { %1022 = vmatmul.msk.f32.vlgmr.msra.gmra.mxu0 %vm525_vm0, %v460_v4  ;;  %1027 = vmatmul.msk.f32.vlgmr.msra.gmra.mxu2 %vm525_vm0, %v465_v6  ;;  %v462_v15 = vld [vmem:[%s1373_s16 + $0x10] sm:$0xff]  ;;  %v463_v17 = vld [vmem:[%s1373_s16 + $0x18] sm:$0xff]  ;;  %v464_v18 = vld [vmem:[%s1373_s16 + $0x20] sm:$0xff]  ;;  %s1429_s16 = sand.u32 1, %s1229_s28  }
  0x22   : > { %v472_v52 = vld [vmem:[%s442_s23 + $0x20] sm:$0xff]  ;;  %v473_v54 = vld [vmem:[%s442_s23 + $0x28] sm:$0xff]  ;;  %v474_v56 = vld [vmem:[%s442_s23 + $0x30] sm:$0xff]  ;;  %s404_s20 = scalar_lea.vmem [#allocation2], %s1429_s16  ;;  %s783_s11 = scalar_lea.sflag [#allocation3], %s1429_s16 }
  0x23   : > { %v468_v53 = vld [vmem:[%s442_s23] sm:$0xff]  ;;  %v469_v55 = vld [vmem:[%s442_s23 + $0x8] sm:$0xff]  ;;  %v470_v57 = vld [vmem:[%s442_s23 + $0x10] sm:$0xff]  ;;  %s804_s24 = sshll.u32 %s404_s20, 4  ;;  %s805_s24 = int_to_ptr.vmem [resolvable:$true] %s804_s24 }
  0x24   : > { %v475_v58 = vld [vmem:[%s442_s23 + $0x38] sm:$0xff] }
  0x25   : > { %507 = vperm.xlu1 %1121, %v481_v8   ;;  %517 = vperm.xlu0 %1120, %v483_v9   ;;  %v471_v59 = vld [vmem:[%s442_s23 + $0x18] sm:$0xff]  ;;  %s802_s23 = scalar_lea.hbm %s1504_s6, %s1237_s30 }
  0x26   : > { %s806_s26 = sshll.u32 %s802_s23, 4  ;;  %s1155_s23 = scalar_lea.hbm %s1504_s6, 2  ;;  %s807_s26 = int_to_ptr.hbm [resolvable:$true] %s806_s26 }
  0x27   : > { %497 = vperm.xlu2 %1122, %v1386_v12   ;;  %s1149_s12 = sshra.s32 %s807_s26, 4  ;;  %s1150_s12 = int_to_ptr.hbm [resolvable:$true] %s1149_s12 }
  0x28   : > { %p1156_p1 = scmp.lt.s32.totalorder %s1150_s12, %s1504_s6 }
  0x29   : > { %1023 = vmatmul.msk.f32.gmra.mxu0 %vm525_vm0, %v461_v10  ;;  %1028 = vmatmul.msk.f32.gmra.mxu2 %vm525_vm0, %v466_v11 }
  0x2d   : > { %487 = vperm.xlu1 %1121, %v1391_v13   ;;  %492 = vperm.xlu0 %1120, %v478_v14  }
  0x2f   : > { %1123 = vset.pattern.permute.xlu2 %v1248_v29 }
  0x30   : > { %628 = vperm.xlu2 %1123, %v484_v5  }
  0x31   : > { %1024 = vmatmul.msk.f32.gmra.mxu0 %vm525_vm0, %v462_v15  ;;  %1029 = vmatmul.msk.f32.gmra.mxu2 %vm525_vm0, %v467_v16 }
  0x35   : > { %1125 = vset.pattern.permute.xlu1 %v1248_v29  ;;  %1124 = vset.pattern.permute.xlu0 %v1248_v29  ;;  %v476_v29 = vld [vmem:[%s446_s14] sm:$0x3f]  ;;  %s1151_s14 = scalar_lea.hbm %s1150_s12, 1 }
  0x36   : > { %620 = vperm.xlu1 %1125, %v482_v1   ;;  %624 = vperm.xlu0 %1124, %v483_v9   ;;  %v1249_v1 = vmov 2   ;;  %p1152_p12 = scmp.ne.s32.totalorder %s1150_s12, %s1151_s14  ;;  %p1157_p2 = scmp.lt.s32.totalorder %s1155_s23, %s1151_s14 }
  0x38   : > { %616 = vperm.xlu2 %1123, %v481_v8   ;;  %p1153_p13 = pnand %p1152_p12, %p1336_p4  ;;  %p1158_p3 = por %p1157_p2, %p1156_p1 }
  0x39   : > { %1025 = vmatmul.msk.f32.gmra.mxu0 %vm525_vm0, %v463_v17 }
  0x3a   : > { %p1154_p0 = pneg %p1153_p13 }
  0x3c   : > { %p1159_p5 = pnand %p1158_p3, %p1154_p0 }
  0x3e   : > { %612 = vperm.xlu1 %1125, %v480_v7   ;;  %604 = vperm.xlu0 %1124, %v478_v14  }
  0x40   : > { %608 = vperm.xlu2 %1123, %v1386_v12  }
  0x41   : > { %1026 = vmatmul.msk.f32.gmra.mxu0 %vm525_vm0, %v464_v18 }
  0x46   : > { %600 = vperm.xlu1 %1125, %v1391_v13   ;;  %1127 = vset.pattern.permute.xlu0 %v1249_v1 }
  0x48   : > { %1126 = vset.pattern.permute.xlu2 %v1249_v1 }
  0x49   : > { %706 = vperm.xlu2 %1126, %v1391_v13  }
  0x79   : > { %v503_v26 = vpop.permute.xlu2 %502 }
  0x81   : > { %v498_v38 = vpop.permute.xlu2 %497 }
  0x8a   : > { %v629_v0 = vpop.permute.xlu2 %628 }
  0x8f   : > { %v523_v22 = vpop.permute.xlu0 %522  ;;  %v513_v24 = vpop.permute.xlu1 %512 }
  0x92   : > { %v617_v5 = vpop.permute.xlu2 %616 }
  0x97   : > { %v518_v27 = vpop.permute.xlu0 %517  ;;  %v508_v33 = vpop.permute.xlu1 %507 }
  0x9a   : > { %v609_v17 = vpop.permute.xlu2 %608 }
  0x9e   : > { %v567_v19 = vpop.f32.mrf.mxu0 }
  0x9f   : > { %v493_v42 = vpop.permute.xlu0 %492  ;;  %v488_v45 = vpop.permute.xlu1 %487 }
  0xa0   : > { %v568_v48 = vadd.f32 %v567_v19, %v488_v45 }
  0xa2   : > { %v591_v51 = vmax.f32 %v568_v48, 0.0 }
  0xa4   : > { %v582_v20 = vpop.f32.mrf.mxu2 }
  0xa5   : > { %v583_v34 = vadd.f32 %v582_v20, %v513_v24 }
  0xa6   : > { %v570_v21 = vpop.f32.mrf.mxu0 }
  0xa7   : > { %v596_v37 = vmax.f32 %v583_v34, 0.0  ;;  %v571_v46 = vadd.f32 %v570_v21, %v493_v42 }
  0xa8   : > { %v621_v2 = vpop.permute.xlu1 %620  ;;  %v625_v6 = vpop.permute.xlu0 %624 }
  0xa9   : > { %v592_v50 = vmax.f32 %v571_v46, 0.0 }
  0xac   : > { %v585_v23 = vpop.f32.mrf.mxu2 }
  0xad   : > { %v586_v30 = vadd.f32 %v585_v23, %v518_v27 }
  0xae   : > { %v573_v25 = vpop.f32.mrf.mxu0 }
  0xaf   : > { %v597_v36 = vmax.f32 %v586_v30, 0.0  ;;  %v574_v43 = vadd.f32 %v573_v25, %v498_v38  ;;  %v707_v30 = vpop.permute.xlu2 %706 }
  0xb0   : > { %v613_v7 = vpop.permute.xlu1 %612  ;;  %v605_v13 = vpop.permute.xlu0 %604 }
  0xb1   : > { %v593_v49 = vmax.f32 %v574_v43, 0.0 }
  0xb4   : > { %v588_v28 = vpop.f32.mrf.mxu2 }
  0xb5   : > { %v589_v31 = vadd.f32 %v588_v28, %v523_v22 }
  0xb6   : > { %v576_v32 = vpop.f32.mrf.mxu0 }
  0xb7   : > { %v598_v35 = vmax.f32 %v589_v31, 0.0  ;;  %v577_v40 = vadd.f32 %v576_v32, %v503_v26 }
  0xb8   : > { %v601_v22 = vpop.permute.xlu1 %600 }
  0xb9   : > { %664 = vmatpush.msra.mxu1 %v598_v35  ;;  %1048 = vmatpush.msra.mxu3 %v598_v35  ;;  %v594_v47 = vmax.f32 %v577_v40, 0.0 }
  0xbb   : > { %665 = vmatpush.msra.mxu1 %v597_v36  ;;  %1049 = vmatpush.msra.mxu3 %v597_v36 }
  0xbd   : > { %666 = vmatpush.msra.mxu1 %v596_v37  ;;  %1050 = vmatpush.msra.mxu3 %v596_v37 }
  0xbe   : > { %v579_v39 = vpop.f32.mrf.mxu0 }
  0xbf   : > { %v580_v41 = vadd.f32 %v579_v39, %v508_v33 }
  0xc1   : > { %v595_v44 = vmax.f32 %v580_v41, 0.0 }
  0xc3   : > { %667 = vmatpush.msra.mxu1 %v595_v44  ;;  %1051 = vmatpush.msra.mxu3 %v595_v44 }
  0xc5   : > { %668 = vmatpush.msra.mxu1 %v594_v47  ;;  %1052 = vmatpush.msra.mxu3 %v594_v47 }
  0xc7   : > { %669 = vmatpush.msra.mxu1 %v593_v49  ;;  %1053 = vmatpush.msra.mxu3 %v593_v49 }
  0xc9   : > { %670 = vmatpush.msra.mxu1 %v592_v50  ;;  %1054 = vmatpush.msra.mxu3 %v592_v50 }
  0xcb   : > { %671 = vmatpush.msra.mxu1 %v591_v51  ;;  %1055 = vmatpush.msra.mxu3 %v591_v51 }
  0xcc   : > { %1034 = vmatmul.msk.f32.vlgmr.msra.gmra.mxu3 %vm631_vm1, %v472_v52  ;;  %1030 = vmatmul.msk.f32.vlgmr.msra.gmra.mxu1 %vm631_vm1, %v468_v53 }
  0xd4   : > { %1035 = vmatmul.msk.f32.gmra.mxu3 %vm631_vm1, %v473_v54  ;;  %1031 = vmatmul.msk.f32.gmra.mxu1 %vm631_vm1, %v469_v55 }
  0xdc   : > { %1036 = vmatmul.msk.f32.gmra.mxu3 %vm631_vm1, %v474_v56  ;;  %1032 = vmatmul.msk.f32.gmra.mxu1 %vm631_vm1, %v470_v57 }
  0xe4   : > { %1037 = vmatmul.msk.f32.gmra.mxu3 %vm631_vm1, %v475_v58  ;;  %1033 = vmatmul.msk.f32.gmra.mxu1 %vm631_vm1, %v471_v59 }
 0x149   : > { %v673_v60 = vpop.f32.mrf.mxu1 }
 0x14a   : > { %v674_v25 = vadd.f32 %v673_v60, %v601_v22 }
 0x14c   : > { %v697_v28 = vmax.f32 %v674_v25, 0.0 }
 0x14f   : > { %v685_v61 = vpop.f32.mrf.mxu3 }
 0x150   : > { %v686_v15 = vadd.f32 %v685_v61, %v617_v5 }
 0x151   : > { %v676_v63 = vpop.f32.mrf.mxu1 }
 0x152   : > { %v701_v20 = vmax.f32 %v686_v15, 0.0  ;;  %v677_v23 = vadd.f32 %v676_v63, %v605_v13 }
 0x154   : > { %v698_v27 = vmax.f32 %v677_v23, 0.0 }
 0x157   : > { %v688_v62 = vpop.f32.mrf.mxu3 }
 0x158   : > { %v689_v11 = vadd.f32 %v688_v62, %v621_v2 }
 0x159   : > { %v679_v4 = vpop.f32.mrf.mxu1 }
 0x15a   : > { %v702_v18 = vmax.f32 %v689_v11, 0.0  ;;  %v680_v21 = vadd.f32 %v679_v4, %v609_v17 }
 0x15c   : > { %v699_v26 = vmax.f32 %v680_v21, 0.0 }
 0x15f   : > { %v691_v3 = vpop.f32.mrf.mxu3 }
 0x160   : > { %v692_v9 = vadd.f32 %v691_v3, %v625_v6 }
 0x161   : > { %v682_v14 = vpop.f32.mrf.mxu1 }
 0x162   : > { %v703_v16 = vmax.f32 %v692_v9, 0.0  ;;  %v683_v19 = vadd.f32 %v682_v14, %v613_v7 }
 0x164   : > { %v700_v24 = vmax.f32 %v683_v19, 0.0 }
 0x167   : > { %v694_v8 = vpop.f32.mrf.mxu3 }
 0x168   : > { %v695_v10 = vadd.f32 %v694_v8, %v629_v0 }
 0x16a   : > { %v704_v12 = vmax.f32 %v695_v10, 0.0 }
 0x16c   : > { %720 = vmatpush.msrb.mxu2 %v704_v12 }
 0x16e   : > { %721 = vmatpush.msrb.mxu2 %v703_v16 }
 0x170   : > { %722 = vmatpush.msrb.mxu2 %v702_v18 }
 0x172   : > { %723 = vmatpush.msrb.mxu2 %v701_v20 }
 0x174   : > { %724 = vmatpush.msrb.mxu2 %v700_v24 }
 0x176   : > { %725 = vmatpush.msrb.mxu2 %v699_v26 }
 0x178   : > { %726 = vmatpush.msrb.mxu2 %v698_v27 }
 0x17a   : > { %727 = vmatpush.msrb.mxu2 %v697_v28 }
 0x17b   : > { %1038 = vmatmul.msk.f32.vlgmr.msrb.gmra.mxu2 %vm631_vm1, %v476_v29 }
 0x1fe   : > { %v729_v31 = vpop.f32.mrf.mxu2 }
 0x1ff   : > { %v730_v32 = vadd.f32 %v729_v31, %v707_v30 }
 0x201   : > { %v734_v33 = vsel %vm733_vm2, %v730_v32, -inf  ;;  %732 = vst [vmem:[%s404_s20 - $0x5] sm:$0x20] %v730_v32 }
 0x202   : > { %v735_v34 = vrot.slane %v734_v33, 4 }
 0x203   : > { %1162 = shalt.err (!%p1159_p5)
}
 0x204   : > { %1056 = dma.vmem_to_hbm [thread:$0]  (%p1336_p4), %s805_s24, 16, %s807_s26, %s783_s11   ;;  %v736_v35 = vmax.f32 %v734_v33, %v735_v34  ;;  %v757_v49 = vlaneseq  ;;  %v1250_v55 = vmov 0.0  }
 0x205   : > { %s1511_s20 = scalar_lea.vmem %s1499_s1, %s1353_s19  ;;  %s816_s11 = scalar_lea.hbm %s1505_s7, %s1237_s30 }
 0x206   : > { %v737_v36 = vrot.slane %v736_v35, 2  ;;  %v758_v51 = vshrl.u32 %v757_v49, 7  ;;  %v1128_v52 = vld [vmem:[%s1511_s20] ss:$0 sm:$0xff]  ;;  %s410_s12 = scalar_lea.vmem [#allocation4], %s1429_s16  ;;  %s820_s21 = sshll.u32 %s816_s11, 4  ;;  %s821_s21 = int_to_ptr.hbm [resolvable:$true] %s820_s21 }
 0x207   : > { %s818_s14 = sshll.u32 %s410_s12, 4  ;;  %s787_s22 = scalar_lea.sflag [#allocation5], %s1429_s16  ;;  %s819_s14 = int_to_ptr.vmem [resolvable:$true] %s818_s14 }
 0x208   : > { %v738_v37 = vmax.f32 %v736_v35, %v737_v36  ;;  %vm760_vm3 = vcmp.eq.s32.totalorder %v758_v51, %v1128_v52  ;;  %s1177_s30 = sshra.s32 %s821_s21, 4  ;;  %s1183_s20 = scalar_lea.hbm %s1505_s7, 2  ;;  %s1178_s30 = int_to_ptr.hbm [resolvable:$true] %s1177_s30 }
 0x209   : > { %v1039_v56 = vsel %vm760_vm3, 1.0, %v1250_v55  ;;  %s1179_s23 = scalar_lea.hbm %s1178_s30, 1  ;;  %p1184_p10 = scmp.lt.s32.totalorder %s1178_s30, %s1505_s7 }
 0x20a   : > { %v739_v38 = vrot.slane %v738_v37, 1  ;;  %p1180_p6 = scmp.ne.s32.totalorder %s1178_s30, %s1179_s23  ;;  %p1185_p11 = scmp.lt.s32.totalorder %s1183_s20, %s1179_s23 }
 0x20c   : > { %v740_v39 = vmax.f32 %v738_v37, %v739_v38  ;;  %p1181_p7 = pnand %p1180_p6, %p1336_p4  ;;  %p1186_p12 = por %p1185_p11, %p1184_p10 }
 0x20e   : > { %v741_v40 = vsub.f32 %v730_v32, %v740_v39  ;;  %p1182_p9 = pneg %p1181_p7 }
 0x210   : > { %v742_v41 = vmul.f32 1.442695, %v741_v40  ;;  %p1187_p13 = pnand %p1186_p12, %p1182_p9 }
 0x212   : > { %1129 = vpow2.f32 %v742_v41 }
 0x218   : > { %v1130_v42 = vpop.eup %1129 }
 0x219   : > { %v744_v43 = vsel %vm733_vm2, %v1130_v42, 0.0 }
 0x21a   : > { %v745_v44 = vrot.slane %v744_v43, 4 }
 0x21c   : > { %v746_v45 = vadd.f32 %v745_v44, %v744_v43 }
 0x21e   : > { %v747_v46 = vrot.slane %v746_v45, 2 }
 0x220   : > { %v748_v47 = vadd.f32 %v747_v46, %v746_v45 }
 0x222   : > { %v749_v48 = vrot.slane %v748_v47, 1 }
 0x224   : > { %v750_v50 = vadd.f32 %v749_v48, %v748_v47 }
 0x226   : > { %1131 = vlog2.f32 %v750_v50 }
 0x22c   : > { %v1132_v53 = vpop.eup %1131 }
 0x22d   : > { %v752_v54 = vmul.f32 0.6931472, %v1132_v53 }
 0x22f   : > { %v753_v57 = vsub.f32 %v741_v40, %v752_v54 }
 0x231   : > { %v754_v58 = vmul.f32 1.442695, %v753_v57  ;;  %v763_v59 = vmul.f32 %v1039_v56, %v753_v57 }
 0x233   : > { %1133 = vpow2.f32 %v754_v58  ;;  %v764_v60 = vsel %vm733_vm2, %v763_v59, 0.0 }
 0x234   : > { %v765_v61 = vrot.slane %v764_v60, 4 }
 0x236   : > { %v766_v62 = vadd.f32 %v765_v61, %v764_v60 }
 0x238   : > { %v767_v63 = vrot.slane %v766_v62, 2 }
 0x239   : > { %v1134_v0 = vpop.eup %1133 }
 0x23a   : > { %v772_v1 = vmul.f32 %v1134_v0, %v753_v57  ;;  %v768_v2 = vadd.f32 %v767_v63, %v766_v62 }
 0x23c   : > { %v773_v3 = vsel %vm733_vm2, %v772_v1, 0.0  ;;  %v769_v4 = vrot.slane %v768_v2, 1 }
 0x23d   : > { %v774_v5 = vrot.slane %v773_v3, 4 }
 0x23e   : > { %v770_v6 = vadd.f32 %v769_v4, %v768_v2 }
 0x23f   : > { %v775_v7 = vadd.f32 %v774_v5, %v773_v3 }
 0x240   : > { %771 = vst [vmem:[%s410_s12] sm:$0x1] %v770_v6 }
 0x241   : > { %v776_v8 = vrot.slane %v775_v7, 2 }
 0x242   : > { %1190 = shalt.err (!%p1187_p13)
}
 0x243   : > { %1057 = dma.vmem_to_hbm [thread:$0]  (%p1336_p4), %s819_s14, 16, %s821_s21, %s787_s22   ;;  %v777_v9 = vadd.f32 %v776_v8, %v775_v7 }
 0x244   : > { %s457_s12 = scalar_lea.vmem %s1506_s8, %s1353_s19 }
 0x245   : > { %v778_v10 = vrot.slane %v777_v9, 1 }
 0x247   : > { %v779_v11 = vadd.f32 %v778_v10, %v777_v9 }
 0x249   : > { %v780_v12 = vsub.f32 0.0, %v779_v11 }
 0x24b   : > { %781 = vst [vmem:[%s457_s12] sm:$0x1] %v780_v12 }
 0x24c PF: > { %p1067_p0 = scmp.ge.s32.totalorder %s1245_s10, 2  ;;  %s835_s30 = sand.u32 1, %s1225_s27  }
 0x24d   : > { %s836_s15 = scalar_lea.sflag [#allocation3], %s835_s30 }
 0x24e   : > { %p1061_p1 = pnand %p1067_p0, %p1343_p8 }
 0x250   : > { %p1062_p2 = pneg %p1061_p1 }
 0x252   : > { %1216 = dma.done.wait (%p1062_p2), %s836_s15, 16  }
 0x253   : > { %1218 = vsyncadd (%p1062_p2), %s836_s15, 4294967280  ;;  %s845_s14 = scalar_lea.sflag [#allocation5], %s835_s30 }
 0x254   : > { %1220 = dma.done.wait (%p1062_p2), %s845_s14, 16  }
 0x255   : > { %1222 = vsyncadd (%p1062_p2), %s845_s14, 4294967280  ;;  %s25_s10 = sadd.s32 1, %s1245_s10   ;;  %s1512_s27 = smov %s1229_s28 }
 0x256   : > { %p22_p4 = scmp.ge.s32.totalorder %s25_s10, 4   ;;  %s1513_s28 = smov %s1233_s29 }
 0x257   : > { %s1514_s29 = smov %s1349_s18  ;;  %s1515_s30 = smov %s1241_s9 }
 0x258   : > { %s1516_s9 = smov %s1518_s13  ;;  %24 = sbr.rel (!%p22_p4) target bundleno = 8 (0x8), region = 123 }
 0x25d   :  { %859 = vsyncpa [#allocation3], 1 }
 0x25e   :  { %861 = vsyncpa [#allocation3 + $0x1], 1 }
 0x25f   :  { %862 = vsyncpa [#allocation5], 1 }
 0x260   :  { %864 = vsyncpa [#allocation5 + $0x1], 1 }

</bundles_post_ra>
